<compile_context>
chip_gen: v5e
topology: v5e:2x2
jax: 0.10.0
libtpu: 0.0.40
codegen_flags: <defaults>
</compile_context>

<pallas_src>
import functools

import jax
import jax.numpy as jnp
from jax import lax
from jax.experimental import pallas as pl
from jax.experimental.pallas import tpu as pltpu

CHANNELS = 64
KSZ = 3
DILATION = 2
LN_EPS = 1e-5


def _residual_block_kernel(x_ref, w_ref, bias_ref, gamma_ref, beta_ref, o_ref,
                           *, ksz, dilation):
    # x_ref / o_ref  : (Bb, C, T)   NCL sub-batch block, input/output dtype
    # w_ref          : (C, ksz*C)   fused f32 weight, w_fused[o, k*C + i] = w[o, i, k]
    # bias/gamma/beta: (C, 1)       f32
    Bb, C, T = x_ref.shape

    # Upcast once; HBM traffic stays in the caller's dtype (bf16 or f32).
    x = x_ref[...].astype(jnp.float32)                       # (Bb, C, T)

    # Causally shifted taps built straight from the input block (no slab
    # scratch / extra VMEM copy).  Row block k holds x[:, :, t - s_k] with
    # s_k = (ksz-1-k)*dilation, zero where the index would be negative.
    taps = []
    for k in range(ksz):
        s = (ksz - 1 - k) * dilation
        if s == 0:
            taps.append(x)
        elif s >= T:
            taps.append(jnp.zeros((Bb, C, T), jnp.float32))
        else:
            taps.append(jnp.concatenate(
                [jnp.zeros((Bb, C, s), jnp.float32), x[:, :, :T - s]], axis=-1))
    rhs = jnp.concatenate(taps, axis=1)                      # (Bb, ksz*C, T)

    # One fused K = ksz*C contraction, batched over the whole sub-batch
    # (single MXU pass per grid step, f32 accumulation).
    w_b = jnp.broadcast_to(w_ref[...][None], (Bb, C, ksz * C))
    conv = jnp.einsum('bok,bkt->bot', w_b, rhs,
                      preferred_element_type=jnp.float32)    # (Bb, C, T)
    conv = conv + bias_ref[...][None]                        # (1, C, 1) broadcast

    # LayerNorm over channels (sublane axis), biased variance (PyTorch).
    mean = jnp.mean(conv, axis=1, keepdims=True)             # (Bb, 1, T)
    cent = conv - mean
    var = jnp.mean(cent * cent, axis=1, keepdims=True)       # (Bb, 1, T)
    ln = cent * lax.rsqrt(var + LN_EPS) * gamma_ref[...][None] + beta_ref[...][None]

    # Residual + ReLU, single full-block store in the caller's dtype/layout.
    o_ref[...] = (x + jnp.maximum(ln, 0.0)).astype(o_ref.dtype)


def _pick_sub_batch(B, C, T, in_bytes, out_bytes, *, ksz=KSZ,
                    target_block_bytes=4 << 20, min_blocks=8):
    """Budget-driven sub-batch size.

    Keeps each grid block's VMEM footprint (double-buffered I/O + in-kernel f32
    working set) around `target_block_bytes`, while leaving at least
    `min_blocks` grid steps (when B allows) so both v7x TensorCores get several
    pipelined blocks on the "parallel" batch axis.
    """
    per_sample = (C * T * 4 * 6                      # x, 3x taps, conv, temps (f32)
                  + C * ksz * C * 4                  # per-sample weight broadcast
                  + 2 * C * T * (in_bytes + out_bytes))  # double-buffered in/out
    max_by_budget = max(1, target_block_bytes // max(per_sample, 1))
    max_by_blocks = max(1, B // min_blocks)
    cap = max(1, min(max_by_budget, max_by_blocks, B))
    for bb in range(cap, 0, -1):                     # largest divisor of B <= cap
        if B % bb == 0:
            return bb
    return 1


def residual_block(x_nct, w_oik, bias, gamma, beta, *, ksz=KSZ,
                   dilation=DILATION, sub_batch=None):
    """x_nct: (B, C, T) float (PyTorch NCL layout). Returns (B, C, T), same dtype."""
    B, C, T = x_nct.shape
    out_dtype = x_nct.dtype
    in_bytes = jnp.dtype(x_nct.dtype).itemsize
    out_bytes = jnp.dtype(out_dtype).itemsize

    if sub_batch is None:
        sub_batch = _pick_sub_batch(B, C, T, in_bytes, out_bytes, ksz=ksz)
    assert B % sub_batch == 0
    num_blocks = B // sub_batch

    # Fused conv weight: (C_out, C_in, ksz) -> (C_out, ksz*C_in);
    # column k*C + i holds w[o, i, k], matching the stacked-tap row order.
    w_fused = jnp.transpose(w_oik, (0, 2, 1)).reshape(C, ksz * C).astype(jnp.float32)
    bias_c1 = bias.reshape(C, 1).astype(jnp.float32)
    gamma_c1 = gamma.reshape(C, 1).astype(jnp.float32)
    beta_c1 = beta.reshape(C, 1).astype(jnp.float32)

    kernel = functools.partial(_residual_block_kernel, ksz=ksz, dilation=dilation)

    # VMEM budget: double-buffered in/out blocks + in-kernel f32 working set
    # + weight copies.  Capped at 48 MiB (below v7x's 64 MiB physical VMEM).
    block_io = sub_batch * C * T * (in_bytes + out_bytes)
    work = sub_batch * (C * T * 4 * 6 + C * ksz * C * 4)
    weight_bytes = (C * ksz * C + 3 * C) * 4
    vmem_needed = 2 * block_io + work + 2 * weight_bytes
    vmem_limit = int(min(max(2 * vmem_needed, 8 << 20), 48 << 20))

    cost = pl.CostEstimate(
        flops=2 * B * T * C * C * ksz,
        transcendentals=B * T,                               # rsqrt per (b, t)
        bytes_accessed=B * C * T * (in_bytes + out_bytes) + weight_bytes,
    )

    out = pl.pallas_call(
        kernel,
        out_shape=jax.ShapeDtypeStruct((B, C, T), out_dtype),
        grid_spec=pltpu.PrefetchScalarGridSpec(
            num_scalar_prefetch=0,
            grid=(num_blocks,),
            in_specs=[
                pl.BlockSpec((sub_batch, C, T), lambda i: (i, 0, 0)),   # x (NCL)
                pl.BlockSpec((C, ksz * C), lambda i: (0, 0)),           # fused W
                pl.BlockSpec((C, 1), lambda i: (0, 0)),                 # conv bias
                pl.BlockSpec((C, 1), lambda i: (0, 0)),                 # ln gamma
                pl.BlockSpec((C, 1), lambda i: (0, 0)),                 # ln beta
            ],
            out_specs=pl.BlockSpec((sub_batch, C, T), lambda i: (i, 0, 0)),
        ),
        compiler_params=pltpu.CompilerParams(
            dimension_semantics=("parallel",),
            vmem_limit_bytes=vmem_limit),
        cost_estimate=cost,
    )(x_nct, w_fused, bias_c1, gamma_c1, beta_c1)

    return out


def _reference(x_nct, w_oik, bias, gamma, beta, *, ksz=KSZ, dilation=DILATION):
    """Pure-JAX reference matching the PyTorch module."""
    B, C, T = x_nct.shape
    pad = (ksz - 1) * dilation
    x_f32 = x_nct.astype(jnp.float32)
    conv = lax.conv_general_dilated(
        x_f32, w_oik.astype(jnp.float32),
        window_strides=(1,),
        padding=[(pad, 0)],
        rhs_dilation=(dilation,),
        dimension_numbers=("NCH", "OIH", "NCH"),
    ) + bias[None, :, None].astype(jnp.float32)
    conv = conv[:, :, :T]
    h = jnp.transpose(conv, (0, 2, 1))                      # (B, T, C)
    mean = jnp.mean(h, axis=-1, keepdims=True)
    var = jnp.mean((h - mean) ** 2, axis=-1, keepdims=True)
    ln = (h - mean) * lax.rsqrt(var + LN_EPS) * gamma + beta
    ln = jnp.transpose(ln, (0, 2, 1))                       # (B, C, T)
    return (x_f32 + jnp.maximum(ln, 0.0)).astype(x_nct.dtype)


if __name__ == "__main__":
    B, C, T = 2, CHANNELS, 16

    key = jax.random.PRNGKey(0)
    kx, kw, kb = jax.random.split(key, 3)

    x = jax.random.normal(kx, (B, C, T), dtype=jnp.float32)
    # Conv1d parameter shapes: weight (C_out, C_in, ksz), bias (C_out,)
    fan_in = C * KSZ
    bound = 1.0 / (fan_in ** 0.5)
    w = jax.random.uniform(kw, (C, C, KSZ), jnp.float32, -bound, bound)
    b = jax.random.uniform(kb, (C,), jnp.float32, -bound, bound)
    # LayerNorm default init: gamma = 1, beta = 0
    gamma = jnp.ones((C,), jnp.float32)
    beta = jnp.zeros((C,), jnp.float32)

    out = jax.block_until_ready(residual_block(x, w, b, gamma, beta))
    ref = jax.block_until_ready(_reference(x, w, b, gamma, beta))

    assert out.shape == (B, C, T)
    assert out.dtype == x.dtype
    err = jnp.max(jnp.abs(out - ref))
    assert jnp.allclose(out, ref, atol=1e-4, rtol=1e-4), f"max abs err = {err}"

    print("KERNEL_OK")
</pallas_src>

<mosaic_0001>
module attributes {stable_mosaic.version = 11 : i64} {
  func.func @_residual_block_kernel(%arg0: i32, %arg1: memref<1x64x16xf32, #tpu.memory_space<vmem>>, %arg2: memref<64x192xf32, #tpu.memory_space<vmem>>, %arg3: memref<64x1xf32, #tpu.memory_space<vmem>>, %arg4: memref<64x1xf32, #tpu.memory_space<vmem>>, %arg5: memref<64x1xf32, #tpu.memory_space<vmem>>, %arg6: memref<1x64x16xf32, #tpu.memory_space<vmem>>) attributes {dimension_semantics = [#tpu.dimension_semantics<parallel>], iteration_bounds = array<i64: 2>, scalar_prefetch = 0 : i64, scratch_operands = 0 : i64, tpu.core_type = #tpu.core_type<tc>, window_params = [{transform_indices = @transform_0, window_bounds = array<i64: 1, 64, 16>}, {pipeline_mode = #tpu.pipeline_mode<synchronous>, transform_indices = @transform_1, window_bounds = array<i64: 64, 192>}, {pipeline_mode = #tpu.pipeline_mode<synchronous>, transform_indices = @transform_2, window_bounds = array<i64: 64, 1>}, {pipeline_mode = #tpu.pipeline_mode<synchronous>, transform_indices = @transform_3, window_bounds = array<i64: 64, 1>}, {pipeline_mode = #tpu.pipeline_mode<synchronous>, transform_indices = @transform_4, window_bounds = array<i64: 64, 1>}, {transform_indices = @transform_5, window_bounds = array<i64: 1, 64, 16>}]} {
    %c0 = arith.constant 0 : index
    %c0_0 = arith.constant 0 : index
    %c0_1 = arith.constant 0 : index
    %0 = vector.load %arg1[%c0, %c0_0, %c0_1] : memref<1x64x16xf32, #tpu.memory_space<vmem>>, vector<1x64x16xf32>
    %cst = arith.constant 0.000000e+00 : f32
    %1 = vector.broadcast %cst : f32 to vector<1x64x4xf32>
    %2 = vector.extract_strided_slice %0 {offsets = [0, 0, 0], sizes = [1, 64, 12], strides = [1, 1, 1]} : vector<1x64x16xf32> to vector<1x64x12xf32>
    %3 = tpu.concatenate %1, %2 in 2 : vector<1x64x4xf32>, vector<1x64x12xf32> -> vector<1x64x16xf32>
    %cst_2 = arith.constant 0.000000e+00 : f32
    %4 = vector.broadcast %cst_2 : f32 to vector<1x64x2xf32>
    %5 = vector.extract_strided_slice %0 {offsets = [0, 0, 0], sizes = [1, 64, 14], strides = [1, 1, 1]} : vector<1x64x16xf32> to vector<1x64x14xf32>
    %6 = tpu.concatenate %4, %5 in 2 : vector<1x64x2xf32>, vector<1x64x14xf32> -> vector<1x64x16xf32>
    %7 = tpu.concatenate %3, %6, %0 in 1 : vector<1x64x16xf32>, vector<1x64x16xf32>, vector<1x64x16xf32> -> vector<1x192x16xf32>
    %c0_3 = arith.constant 0 : index
    %c0_4 = arith.constant 0 : index
    %8 = vector.load %arg2[%c0_3, %c0_4] : memref<64x192xf32, #tpu.memory_space<vmem>>, vector<64x192xf32>
    %9 = vector.shape_cast %8 : vector<64x192xf32> to vector<1x64x192xf32>
    "tpu.trace_start"() <{level = 10 : i32, message = "bok,bkt->bot"}> : () -> ()
    %cst_5 = arith.constant dense<0.000000e+00> : vector<1x64x16xf32>
    %10 = tpu.matmul %9, %7, %cst_5 {dimension_numbers = #tpu.dot_dimension_numbers<[2], [1], [1], [2], [0, 0, 0, 1, 1, 2], [0], [0]>} : vector<1x64x192xf32>, vector<1x192x16xf32>, vector<1x64x16xf32> -> vector<1x64x16xf32>
    "tpu.trace_stop"() : () -> ()
    %c0_6 = arith.constant 0 : index
    %c0_7 = arith.constant 0 : index
    %11 = vector.load %arg3[%c0_6, %c0_7] : memref<64x1xf32, #tpu.memory_space<vmem>>, vector<64x1xf32>
    %12 = vector.shape_cast %11 : vector<64x1xf32> to vector<1x64x1xf32>
    %13 = vector.broadcast %12 : vector<1x64x1xf32> to vector<1x64x16xf32>
    %14 = arith.addf %10, %13 : vector<1x64x16xf32>
    %cst_8 = arith.constant dense<0.000000e+00> : vector<1x16xf32>
    %15 = vector.multi_reduction <add>, %14, %cst_8 [1] : vector<1x64x16xf32> to vector<1x16xf32>
    %16 = vector.shape_cast %15 : vector<1x16xf32> to vector<1x1x16xf32>
    %cst_9 = arith.constant 6.400000e+01 : f32
    %17 = vector.broadcast %cst_9 : f32 to vector<1x1x16xf32>
    %18 = arith.divf %16, %17 : vector<1x1x16xf32>
    %19 = vector.broadcast %18 : vector<1x1x16xf32> to vector<1x64x16xf32>
    %20 = arith.subf %14, %19 : vector<1x64x16xf32>
    %21 = arith.mulf %20, %20 : vector<1x64x16xf32>
    %cst_10 = arith.constant dense<0.000000e+00> : vector<1x16xf32>
    %22 = vector.multi_reduction <add>, %21, %cst_10 [1] : vector<1x64x16xf32> to vector<1x16xf32>
    %23 = vector.shape_cast %22 : vector<1x16xf32> to vector<1x1x16xf32>
    %cst_11 = arith.constant 6.400000e+01 : f32
    %24 = vector.broadcast %cst_11 : f32 to vector<1x1x16xf32>
    %25 = arith.divf %23, %24 : vector<1x1x16xf32>
    %cst_12 = arith.constant 9.99999974E-6 : f32
    %26 = vector.broadcast %cst_12 : f32 to vector<1x1x16xf32>
    %27 = arith.addf %25, %26 : vector<1x1x16xf32>
    %28 = math.rsqrt %27 : vector<1x1x16xf32>
    %29 = vector.broadcast %28 : vector<1x1x16xf32> to vector<1x64x16xf32>
    %30 = arith.mulf %20, %29 : vector<1x64x16xf32>
    %c0_13 = arith.constant 0 : index
    %c0_14 = arith.constant 0 : index
    %31 = vector.load %arg4[%c0_13, %c0_14] : memref<64x1xf32, #tpu.memory_space<vmem>>, vector<64x1xf32>
    %32 = vector.shape_cast %31 : vector<64x1xf32> to vector<1x64x1xf32>
    %33 = vector.broadcast %32 : vector<1x64x1xf32> to vector<1x64x16xf32>
    %34 = arith.mulf %30, %33 : vector<1x64x16xf32>
    %c0_15 = arith.constant 0 : index
    %c0_16 = arith.constant 0 : index
    %35 = vector.load %arg5[%c0_15, %c0_16] : memref<64x1xf32, #tpu.memory_space<vmem>>, vector<64x1xf32>
    %36 = vector.shape_cast %35 : vector<64x1xf32> to vector<1x64x1xf32>
    %37 = vector.broadcast %36 : vector<1x64x1xf32> to vector<1x64x16xf32>
    %38 = arith.addf %34, %37 : vector<1x64x16xf32>
    %cst_17 = arith.constant 0.000000e+00 : f32
    %39 = vector.broadcast %cst_17 : f32 to vector<1x64x16xf32>
    %40 = arith.maximumf %38, %39 : vector<1x64x16xf32>
    %41 = arith.addf %0, %40 : vector<1x64x16xf32>
    %c0_18 = arith.constant 0 : index
    %c0_19 = arith.constant 0 : index
    %c0_20 = arith.constant 0 : index
    %42 = vector.load %arg6[%c0_18, %c0_19, %c0_20] : memref<1x64x16xf32, #tpu.memory_space<vmem>>, vector<1x64x16xf32>
    tpu.vector_store %arg6[%c0_18, %c0_19, %c0_20], %41 {strides = array<i32>} : memref<1x64x16xf32, #tpu.memory_space<vmem>>, vector<1x64x16xf32>,
    return
  }
  func.func @transform_0(%arg0: i32) -> (i32, i32, i32) {
    %c0_i32 = arith.constant 0 : i32
    %c0_i32_0 = arith.constant 0 : i32
    %c0_i32_1 = arith.constant 0 : i32
    return %arg0, %c0_i32, %c0_i32_0 : i32, i32, i32
  }
  func.func @transform_1(%arg0: i32) -> (i32, i32) {
    %c0_i32 = arith.constant 0 : i32
    %c0_i32_0 = arith.constant 0 : i32
    %c0_i32_1 = arith.constant 0 : i32
    return %c0_i32, %c0_i32_0 : i32, i32
  }
  func.func @transform_2(%arg0: i32) -> (i32, i32) {
    %c0_i32 = arith.constant 0 : i32
    %c0_i32_0 = arith.constant 0 : i32
    %c0_i32_1 = arith.constant 0 : i32
    return %c0_i32, %c0_i32_0 : i32, i32
  }
  func.func @transform_3(%arg0: i32) -> (i32, i32) {
    %c0_i32 = arith.constant 0 : i32
    %c0_i32_0 = arith.constant 0 : i32
    %c0_i32_1 = arith.constant 0 : i32
    return %c0_i32, %c0_i32_0 : i32, i32
  }
  func.func @transform_4(%arg0: i32) -> (i32, i32) {
    %c0_i32 = arith.constant 0 : i32
    %c0_i32_0 = arith.constant 0 : i32
    %c0_i32_1 = arith.constant 0 : i32
    return %c0_i32, %c0_i32_0 : i32, i32
  }
  func.func @transform_5(%arg0: i32) -> (i32, i32, i32) {
    %c0_i32 = arith.constant 0 : i32
    %c0_i32_0 = arith.constant 0 : i32
    %c0_i32_1 = arith.constant 0 : i32
    return %arg0, %c0_i32, %c0_i32_0 : i32, i32, i32
  }
}

</mosaic_0001>

<bundles_post_ra>
// kernel: tpu_custom_call.1
= control target key start
LH: loop header
LB: loop body
LE: loop exit
PB: predicated region body
PF: predicated region fallthrough
CT: control target
= control target key end

     0   :  { %s894_s18 = smov 0   ;;  %s1223_s0 = inlined_call_operand.vmem [shape: f32[2,64,16], index: 0, kind: input, shape index: {}]   ;;  %s1224_s1 = inlined_call_operand.vmem [shape: f32[64,192], index: 1, kind: input, shape index: {}]   ;;  %s1225_s2 = inlined_call_operand.vmem [shape: f32[64,1], index: 2, kind: input, shape index: {}]   ;;  %s1226_s3 = inlined_call_operand.vmem [shape: f32[64,1], index: 3, kind: input, shape index: {}]   ;;  %s1227_s4 = inlined_call_operand.vmem [shape: f32[64,1], index: 4, kind: input, shape index: {}]   ;;  %s1228_s5 = inlined_call_operand.vmem [shape: f32[2,64,16], index: 5, kind: output, shape index: {}]  }
   0x1 LB: > { %s756_s19 = sadd.s32 4294967295, %s858_s18   ;;  %p760_p0 = scmp.ge.s32.totalorder %s858_s18, 1  ;;  %s858_s18 = sphi %s894_s18, %s15_s18  }
   0x2   : > { %p187_p1 = scmp.lt.s32.totalorder %s858_s18, 3 }
   0x4   : > { %p188_p2 = pnand %p760_p0, %p187_p1 }
   0x5   : > { %p215_p3 = scmp.lt.s32.totalorder (!%p188_p2), %s756_s19, 1  ;;  %s860_s24 = smov (!%p188_p2), 2  }
   0x6   : > { %191 = sbr.rel (%p188_p2) target bundleno = 427 (0x1ab), region = 40  ;;  %s861_s25 = smov (!%p188_p2), 4  }
   0xb   : > { %s1234_s19 = smov (!%p215_p3, %s756_s19), 1  ;;  %v323_v8 = vld [vmem:[%s1225_s2] sm:$0xff]  ;;  %v862_v9 = vmov 0   ;;  %v326_v10 = vld [vmem:[%s1225_s2 + $0x18] sm:$0xff]  ;;  %v328_v11 = vld [vmem:[%s1225_s2 + $0x28] sm:$0xff]  ;;  %vm371_vm0 = vcmask 523264  }
   0xc   : > { %s807_s20 = sshll.u32 %s1234_s19, 6  ;;  %845 = vset.pattern.permute.xlu1 %v862_v9  ;;  %847 = vset.pattern.permute.xlu0 %v862_v9  ;;  %v308_v13 = vld [vmem:[%s1224_s1 + $0x8] sm:$0xff]  ;;  %vm298_vm1 = vcmask 15360   ;;  %v565_v14 = vld [vmem:[%s1226_s3] sm:$0xff]  ;;  %v325_v18 = vld [vmem:[%s1225_s2 + $0x10] sm:$0xff]  ;;  %vm265_vm3 = vcmask 31744  }
   0xd   : > { %s219_s23 = scalar_lea.vmem %s1223_s0, %s807_s20  ;;  %846 = vset.pattern.permute.xlu2 %v862_v9  ;;  %vm974_vm2 = vmneg %vm298_vm1  ;;  %v310_v19 = vld [vmem:[%s1224_s1 + $0x18] sm:$0xff]  ;;  %v324_v24 = vld [vmem:[%s1225_s2 + $0x8] sm:$0xff]  ;;  %vm478_vm5 = vcmask 130048   ;;  %s224_s17 = scalar_lea.vmem %s1228_s5, %s807_s20 }
   0xe   : > { %v910_v0 = vld [vmem:[%s219_s23 + $0x38] sm:$0xff]  ;;  %v912_v1 = vld [vmem:[%s219_s23 + $0x28] sm:$0xff]  ;;  %v920_v3 = vld [vmem:[%s219_s23 + $0x30] sm:$0xff] }
   0xf   : > { %288 = vrot.lane.b32.xlu0 %v910_v0, %s860_s24  ;;  %284 = vrot.lane.b32.xlu1 %v912_v1, %s860_s24  ;;  %v916_v2 = vld [vmem:[%s219_s23 + $0x18] sm:$0xff]  ;;  %v925_v4 = vld [vmem:[%s219_s23 + $0x20] sm:$0xff]  ;;  %vm1038_vm4 = vmneg %vm265_vm3 }
  0x10   : > { %445 = vmatpush.msra.mxu1 %v910_v0  ;;  %825 = vmatpush.msra.mxu3 %v910_v0  ;;  %v933_v5 = vld [vmem:[%s219_s23 + $0x10] sm:$0xff]  ;;  %v940_v6 = vld [vmem:[%s219_s23 + $0x8] sm:$0xff]  ;;  %v942_v7 = vld [vmem:[%s219_s23] sm:$0xff] }
  0x11   : > { %280 = vrot.lane.b32.xlu2 %v916_v2, %s860_s24  ;;  %v568_v21 = vld [vmem:[%s1226_s3 + $0x18] sm:$0xff]  ;;  %v312_v26 = vld [vmem:[%s1224_s1 + $0x28] sm:$0xff]  ;;  %v571_v28 = vld [vmem:[%s1226_s3 + $0x30] sm:$0xff] }
  0x12   : > { %446 = vmatpush.msra.mxu1 %v920_v3  ;;  %826 = vmatpush.msra.mxu3 %v920_v3  ;;  %v330_v25 = vld [vmem:[%s1225_s2 + $0x38] sm:$0xff]  ;;  %v327_v29 = vld [vmem:[%s1225_s2 + $0x20] sm:$0xff]  ;;  %v567_v30 = vld [vmem:[%s1226_s3 + $0x10] sm:$0xff] }
  0x13   : > { %v314_v33 = vld [vmem:[%s1224_s1 + $0x38] sm:$0xff]  ;;  %v622_v35 = vld [vmem:[%s1227_s4 + $0x8] sm:$0xff]  ;;  %v329_v37 = vld [vmem:[%s1225_s2 + $0x30] sm:$0xff] }
  0x14   : > { %447 = vmatpush.msra.mxu1 %v912_v1  ;;  %827 = vmatpush.msra.mxu3 %v912_v1  ;;  %v570_v38 = vld [vmem:[%s1226_s3 + $0x28] sm:$0xff]  ;;  %v318_v42 = vld [vmem:[%s1224_s1 + $0x58] sm:$0xff]  ;;  %v625_v43 = vld [vmem:[%s1227_s4 + $0x20] sm:$0xff] }
  0x15   : > { %v316_v41 = vld [vmem:[%s1224_s1 + $0x48] sm:$0xff]  ;;  %v621_v45 = vld [vmem:[%s1227_s4] sm:$0xff]  ;;  %v628_v50 = vld [vmem:[%s1227_s4 + $0x38] sm:$0xff] }
  0x16   : > { %448 = vmatpush.msra.mxu1 %v925_v4  ;;  %828 = vmatpush.msra.mxu3 %v925_v4  ;;  %v566_v44 = vld [vmem:[%s1226_s3 + $0x8] sm:$0xff]  ;;  %v307_v51 = vld [vmem:[%s1224_s1] sm:$0xff]  ;;  %v313_v52 = vld [vmem:[%s1224_s1 + $0x30] sm:$0xff] }
  0x17   : > { %286 = vrot.lane.b32.xlu0 %v920_v3, %s860_s24  ;;  %282 = vrot.lane.b32.xlu1 %v925_v4, %s860_s24  ;;  %v320_v49 = vld [vmem:[%s1224_s1 + $0x68] sm:$0xff]  ;;  %v569_v54 = vld [vmem:[%s1226_s3 + $0x20] sm:$0xff] }
  0x18   : > { %449 = vmatpush.msra.mxu1 %v916_v2  ;;  %829 = vmatpush.msra.mxu3 %v916_v2  ;;  %v624_v55 = vld [vmem:[%s1227_s4 + $0x18] sm:$0xff]  ;;  %v309_v57 = vld [vmem:[%s1224_s1 + $0x10] sm:$0xff]  ;;  %v315_v58 = vld [vmem:[%s1224_s1 + $0x40] sm:$0xff] }
  0x19   : > { %278 = vrot.lane.b32.xlu2 %v933_v5, %s860_s24  ;;  %v322_v56 = vld [vmem:[%s1224_s1 + $0x78] sm:$0xff]  ;;  %v627_v60 = vld [vmem:[%s1227_s4 + $0x30] sm:$0xff]  ;;  %v311_v61 = vld [vmem:[%s1224_s1 + $0x20] sm:$0xff] }
  0x1a   : > { %450 = vmatpush.msra.mxu1 %v933_v5  ;;  %830 = vmatpush.msra.mxu3 %v933_v5  ;;  %v572_v59 = vld [vmem:[%s1226_s3 + $0x38] sm:$0xff]  ;;  %v317_v62 = vld [vmem:[%s1224_s1 + $0x50] sm:$0xff]  ;;  %v626_v9 = vld [vmem:[%s1227_s4 + $0x28] sm:$0xff] }
  0x1b   : > { %v623_v63 = vld [vmem:[%s1227_s4 + $0x10] sm:$0xff] }
  0x1c   : > { %451 = vmatpush.msra.mxu1 %v940_v6  ;;  %831 = vmatpush.msra.mxu3 %v940_v6 }
  0x1e   : > { %452 = vmatpush.msra.mxu1 %v942_v7  ;;  %832 = vmatpush.msra.mxu3 %v942_v7 }
  0x1f   : > { %276 = vrot.lane.b32.xlu0 %v940_v6, %s860_s24  ;;  %274 = vrot.lane.b32.xlu1 %v942_v7, %s860_s24 }
  0x20   : > { %797 = vmatmul.msk.f32.vlgmr.msra.gmra.mxu1 %vm371_vm0, %v308_v13  ;;  %802 = vmatmul.msk.f32.vlgmr.msra.gmra.mxu3 %vm371_vm0, %v318_v42 }
  0x21   : > { %255 = vrot.lane.b32.xlu2 %v910_v0, %s861_s25 }
  0x27   : > { %253 = vrot.lane.b32.xlu0 %v920_v3, %s861_s25  ;;  %251 = vrot.lane.b32.xlu1 %v912_v1, %s861_s25 }
  0x28   : > { %798 = vmatmul.msk.f32.gmra.mxu1 %vm371_vm0, %v310_v19  ;;  %803 = vmatmul.msk.f32.gmra.mxu3 %vm371_vm0, %v320_v49 }
  0x29   : > { %249 = vrot.lane.b32.xlu2 %v925_v4, %s861_s25 }
  0x2f   : > { %247 = vrot.lane.b32.xlu0 %v916_v2, %s861_s25  ;;  %245 = vrot.lane.b32.xlu1 %v933_v5, %s861_s25 }
  0x30   : > { %799 = vmatmul.msk.f32.gmra.mxu1 %vm371_vm0, %v312_v26  ;;  %804 = vmatmul.msk.f32.gmra.mxu3 %vm371_vm0, %v322_v56 }
  0x31   : > { %243 = vrot.lane.b32.xlu2 %v940_v6, %s861_s25 }
  0x37   : > { %241 = vrot.lane.b32.xlu0 %v942_v7, %s861_s25  ;;  %333 = vperm.xlu1 %845, %v323_v8   ;;  %v319_v8 = vld [vmem:[%s1224_s1 + $0x60] sm:$0xff] }
  0x38   : > { %800 = vmatmul.msk.f32.gmra.mxu1 %vm371_vm0, %v314_v33 }
  0x39   : > { %338 = vperm.xlu2 %846, %v324_v24  }
  0x3f   : > { %348 = vperm.xlu1 %845, %v326_v10   ;;  %343 = vperm.xlu0 %847, %v325_v18   ;;  %v321_v10 = vld [vmem:[%s1224_s1 + $0x70] sm:$0xff] }
  0x40   : > { %801 = vmatmul.msk.f32.gmra.mxu1 %vm371_vm0, %v316_v41 }
  0x41   : > { %353 = vperm.xlu2 %846, %v327_v29  }
  0x47   : > { %358 = vperm.xlu1 %845, %v328_v11   ;;  %368 = vperm.xlu0 %847, %v330_v25  }
  0x49   : > { %363 = vperm.xlu2 %846, %v329_v37  }
  0x4f   : > { %575 = vperm.xlu1 %845, %v565_v14   ;;  %585 = vperm.xlu0 %847, %v567_v30  }
  0x51   : > { %580 = vperm.xlu2 %846, %v566_v44  }
  0x57   : > { %590 = vperm.xlu1 %845, %v568_v21   ;;  %600 = vperm.xlu0 %847, %v570_v38  }
  0x59   : > { %595 = vperm.xlu2 %846, %v569_v54  }
  0x5f   : > { %605 = vperm.xlu1 %845, %v571_v28   ;;  %631 = vperm.xlu0 %847, %v621_v45  }
  0x61   : > { %610 = vperm.xlu2 %846, %v572_v59  }
  0x67   : > { %636 = vperm.xlu1 %845, %v622_v35   ;;  %646 = vperm.xlu0 %847, %v624_v55  }
  0x69   : > { %641 = vperm.xlu2 %846, %v623_v63  }
  0x6b   : > { %v281_v12 = vpop.permute.xlu2 %280 }
  0x6f   : > { %651 = vperm.xlu1 %845, %v625_v43   ;;  %661 = vperm.xlu0 %847, %v627_v60  }
  0x71   : > { %656 = vperm.xlu2 %846, %v626_v9  }
  0x73   : > { %v279_v20 = vpop.permute.xlu2 %278 }
  0x77   : > { %666 = vperm.xlu1 %845, %v628_v50  }
  0x7b   : > { %v256_v27 = vpop.permute.xlu2 %255 }
  0x81   : > { %v289_v16 = vpop.permute.xlu0 %288  ;;  %v285_v17 = vpop.permute.xlu1 %284 }
  0x82   : > { %766 = vmatpush.msk.msra.mxu0 %vm974_vm2, %v289_v16  ;;  %809 = vmatpush.msk.msra.mxu2 %vm974_vm2, %v289_v16 }
  0x83   : > { %v250_v36 = vpop.permute.xlu2 %249 }
  0x89   : > { %v287_v22 = vpop.permute.xlu0 %286  ;;  %v283_v23 = vpop.permute.xlu1 %282 }
  0x8a   : > { %768 = vmatpush.msk.msra.mxu0 %vm974_vm2, %v287_v22  ;;  %810 = vmatpush.msk.msra.mxu2 %vm974_vm2, %v287_v22 }
  0x8b   : > { %v244_v48 = vpop.permute.xlu2 %243 }
  0x8c   : > { %770 = vmatpush.msk.msra.mxu0 %vm974_vm2, %v285_v17  ;;  %811 = vmatpush.msk.msra.mxu2 %vm974_vm2, %v285_v17 }
  0x8e   : > { %772 = vmatpush.msk.msra.mxu0 %vm974_vm2, %v283_v23  ;;  %812 = vmatpush.msk.msra.mxu2 %vm974_vm2, %v283_v23 }
  0x90   : > { %774 = vmatpush.msk.msra.mxu0 %vm974_vm2, %v281_v12  ;;  %813 = vmatpush.msk.msra.mxu2 %vm974_vm2, %v281_v12 }
  0x91   : > { %v277_v31 = vpop.permute.xlu0 %276  ;;  %v275_v32 = vpop.permute.xlu1 %274 }
  0x92   : > { %776 = vmatpush.msk.msra.mxu0 %vm974_vm2, %v279_v20  ;;  %814 = vmatpush.msk.msra.mxu2 %vm974_vm2, %v279_v20 }
  0x93   : > { %v339_v18 = vpop.permute.xlu2 %338 }
  0x94   : > { %778 = vmatpush.msk.msra.mxu0 %vm974_vm2, %v277_v31  ;;  %815 = vmatpush.msk.msra.mxu2 %vm974_vm2, %v277_v31 }
  0x96   : > { %780 = vmatpush.msk.msra.mxu0 %vm974_vm2, %v275_v32  ;;  %816 = vmatpush.msk.msra.mxu2 %vm974_vm2, %v275_v32 }
  0x98   : > { %782 = vmatpush.msk.msra.mxu0 %vm1038_vm4, %v256_v27  ;;  %817 = vmatpush.msk.msra.mxu2 %vm1038_vm4, %v256_v27 }
  0x99   : > { %v254_v39 = vpop.permute.xlu0 %253  ;;  %v252_v40 = vpop.permute.xlu1 %251 }
  0x9a   : > { %784 = vmatpush.msk.msra.mxu0 %vm1038_vm4, %v254_v39  ;;  %818 = vmatpush.msk.msra.mxu2 %vm1038_vm4, %v254_v39 }
  0x9b   : > { %v354_v29 = vpop.permute.xlu2 %353 }
  0x9c   : > { %786 = vmatpush.msk.msra.mxu0 %vm1038_vm4, %v252_v40  ;;  %819 = vmatpush.msk.msra.mxu2 %vm1038_vm4, %v252_v40 }
  0x9d   : > { %v454_v11 = vpop.f32.mrf.mxu1 }
  0x9e   : > { %788 = vmatpush.msk.msra.mxu0 %vm1038_vm4, %v250_v36  ;;  %820 = vmatpush.msk.msra.mxu2 %vm1038_vm4, %v250_v36 }
  0xa1   : > { %v248_v46 = vpop.permute.xlu0 %247  ;;  %v246_v47 = vpop.permute.xlu1 %245 }
  0xa2   : > { %790 = vmatpush.msk.msra.mxu0 %vm1038_vm4, %v248_v46  ;;  %821 = vmatpush.msk.msra.mxu2 %vm1038_vm4, %v248_v46 }
  0xa3   : > { %v469_v27 = vpop.f32.mrf.mxu3  ;;  %v364_v45 = vpop.permute.xlu2 %363 }
  0xa4   : > { %792 = vmatpush.msk.msra.mxu0 %vm1038_vm4, %v246_v47  ;;  %822 = vmatpush.msk.msra.mxu2 %vm1038_vm4, %v246_v47  ;;  %v863_v47 = vmov 64.0  }
  0xa5   : > { %v457_v12 = vpop.f32.mrf.mxu1  ;;  %848 = vrcp.f32 %v863_v47 }
  0xa6   : > { %794 = vmatpush.msk.msra.mxu0 %vm1038_vm4, %v244_v48  ;;  %823 = vmatpush.msk.msra.mxu2 %vm1038_vm4, %v244_v48 }
  0xa9   : > { %v242_v53 = vpop.permute.xlu0 %241  ;;  %v334_v15 = vpop.permute.xlu1 %333 }
  0xaa   : > { %796 = vmatpush.msk.msra.mxu0 %vm1038_vm4, %v242_v53  ;;  %824 = vmatpush.msk.msra.mxu2 %vm1038_vm4, %v242_v53 }
  0xab   : > { %412 = vmatmul.f32.vlgmr.msra.gmra.mxu0 %v307_v51  ;;  %421 = vmatmul.f32.vlgmr.msra.gmra.mxu2 %v313_v52  ;;  %v472_v43 = vpop.f32.mrf.mxu3  ;;  %v849_v55 = vpop.eup %848 }
  0xac   : > { %v501_v63 = vmul.f32 64.0, %v849_v55  ;;  %vm505_vm6 = vweird.f32 %v849_v55 }
  0xad   : > { %v460_v16 = vpop.f32.mrf.mxu1 }
  0xb1   : > { %v344_v21 = vpop.permute.xlu0 %343  ;;  %v349_v23 = vpop.permute.xlu1 %348 }
  0xb3   : > { %415 = vmatmul.f32.gmra.mxu0 %v309_v57  ;;  %424 = vmatmul.f32.gmra.mxu2 %v315_v58  ;;  %v475_v60 = vpop.f32.mrf.mxu3 }
  0xb5   : > { %v463_v26 = vpop.f32.mrf.mxu1 }
  0xb9   : > { %v359_v38 = vpop.permute.xlu1 %358  ;;  %v369_v57 = vpop.permute.xlu0 %368 }
  0xbb   : > { %418 = vmatmul.f32.gmra.mxu0 %v311_v61  ;;  %427 = vmatmul.f32.gmra.mxu2 %v317_v62 }
  0xbd   : > { %v466_v42 = vpop.f32.mrf.mxu1 }
  0xc3   : > { %430 = vmatmul.f32.gmra.mxu2 %v319_v8 }
  0xcb   : > { %433 = vmatmul.f32.gmra.mxu2 %v321_v10 }
 0x128   : > { %v413_v13 = vpop.f32.mrf.mxu0 }
 0x129   : > { %v414_v24 = vadd.f32 %v413_v13, %v334_v15 }
 0x12b   : > { %v455_v30 = vadd.f32 %v454_v11, %v414_v24 }
 0x12d   : > { %v479_v35 = vsel %vm478_vm5, %v455_v30, 0.0 }
 0x12e   : > { %v422_v14 = vpop.f32.mrf.mxu2 }
 0x12f   : > { %v423_v33 = vadd.f32 %v422_v14, %v349_v23 }
 0x130   : > { %v416_v17 = vpop.f32.mrf.mxu0 }
 0x131   : > { %v417_v20 = vadd.f32 %v416_v17, %v339_v18  ;;  %v464_v39 = vadd.f32 %v463_v26, %v423_v33 }
 0x133   : > { %v458_v28 = vadd.f32 %v457_v12, %v417_v20  ;;  %v484_v48 = vsel %vm478_vm5, %v464_v39, 0.0  ;;  %v502_v12 = vsub.f32 1.0, %v501_v63 }
 0x135   : > { %v480_v34 = vsel %vm478_vm5, %v458_v28, 0.0  ;;  %v503_v15 = vmul.f32 %v849_v55, %v502_v12 }
 0x136   : > { %v425_v19 = vpop.f32.mrf.mxu2  ;;  %v481_v37 = vadd.f32 %v480_v34, %v479_v35 }
 0x137   : > { %v426_v40 = vadd.f32 %v425_v19, %v354_v29  ;;  %v504_v18 = vadd.f32 %v849_v55, %v503_v15 }
 0x138   : > { %v419_v22 = vpop.f32.mrf.mxu0 }
 0x139   : > { %v420_v25 = vadd.f32 %v419_v22, %v344_v21  ;;  %v467_v49 = vadd.f32 %v466_v42, %v426_v40  ;;  %v506_v21 = vsel %vm505_vm6, %v849_v55, %v504_v18 }
 0x13b   : > { %v461_v31 = vadd.f32 %v460_v16, %v420_v25  ;;  %v486_v53 = vsel %vm478_vm5, %v467_v49, 0.0 }
 0x13d   : > { %v482_v36 = vsel %vm478_vm5, %v461_v31, 0.0 }
 0x13e   : > { %v428_v32 = vpop.f32.mrf.mxu2  ;;  %v483_v41 = vadd.f32 %v482_v36, %v481_v37  ;;  %v576_v37 = vpop.permute.xlu1 %575 }
 0x13f   : > { %v429_v44 = vadd.f32 %v428_v32, %v359_v38 }
 0x140   : > { %v485_v51 = vadd.f32 %v484_v48, %v483_v41 }
 0x141   : > { %v470_v52 = vadd.f32 %v469_v27, %v429_v44 }
 0x142   : > { %v487_v56 = vadd.f32 %v486_v53, %v485_v51 }
 0x143   : > { %v488_v58 = vsel %vm478_vm5, %v470_v52, 0.0 }
 0x144   : > { %v489_v8 = vadd.f32 %v488_v58, %v487_v56  ;;  %v581_v56 = vpop.permute.xlu2 %580 }
 0x146   : > { %v431_v46 = vpop.f32.mrf.mxu2 }
 0x147   : > { %v432_v50 = vadd.f32 %v431_v46, %v364_v45 }
 0x149   : > { %v473_v54 = vadd.f32 %v472_v43, %v432_v50 }
 0x14b   : > { %v490_v61 = vsel %vm478_vm5, %v473_v54, 0.0 }
 0x14c   : > { %v491_v10 = vadd.f32 %v490_v61, %v489_v8  ;;  %v596_v8 = vpop.permute.xlu2 %595 }
 0x14e   : > { %v434_v59 = vpop.f32.mrf.mxu2 }
 0x14f   : > { %v435_v62 = vadd.f32 %v434_v59, %v369_v57  ;;  %v586_v57 = vpop.permute.xlu0 %585 }
 0x151   : > { %v476_v9 = vadd.f32 %v475_v60, %v435_v62 }
 0x153   : > { %v492_v11 = vsel %vm478_vm5, %v476_v9, 0.0 }
 0x154   : > { %v493_v13 = vadd.f32 %v492_v11, %v491_v10  ;;  %v611_v15 = vpop.permute.xlu2 %610 }
 0x156   : > { %v494_v14 = vrot.slane %v493_v13, 4 }
 0x158   : > { %v495_v16 = vadd.f32 %v494_v14, %v493_v13 }
 0x15a   : > { %v496_v17 = vrot.slane %v495_v16, 2 }
 0x15c   : > { %v497_v19 = vadd.f32 %v496_v17, %v495_v16 }
 0x15e   : > { %v498_v20 = vrot.slane %v497_v19, 1 }
 0x160   : > { %v499_v22 = vadd.f32 %v498_v20, %v497_v19 }
 0x162   : > { %v507_v23 = vmul.f32 %v506_v21, %v499_v22 }
 0x164   : > { %v1166_v24 = vsub.f32 %v455_v30, %v507_v23  ;;  %v1168_v25 = vsub.f32 %v458_v28, %v507_v23  ;;  %v1170_v26 = vsub.f32 %v461_v31, %v507_v23  ;;  %v1172_v27 = vsub.f32 %v464_v39, %v507_v23 }
 0x165   : > { %v1174_v29 = vsub.f32 %v467_v49, %v507_v23  ;;  %v513_v35 = vsub.f32 %v470_v52, %v507_v23  ;;  %v514_v38 = vsub.f32 %v473_v54, %v507_v23  ;;  %v515_v42 = vsub.f32 %v476_v9, %v507_v23  ;;  %v591_v54 = vpop.permute.xlu1 %590  ;;  %v601_v9 = vpop.permute.xlu0 %600 }
 0x166   : > { %v516_v32 = vmul.f32 %v1166_v24, %v1166_v24  ;;  %v517_v33 = vmul.f32 %v1168_v25, %v1168_v25  ;;  %v518_v34 = vmul.f32 %v1170_v26, %v1170_v26  ;;  %v519_v28 = vmul.f32 %v1172_v27, %v1172_v27  ;;  %v642_v23 = vpop.permute.xlu2 %641 }
 0x167   : > { %v520_v39 = vmul.f32 %v1174_v29, %v1174_v29  ;;  %v521_v43 = vmul.f32 %v513_v35, %v513_v35  ;;  %v522_v46 = vmul.f32 %v514_v38, %v514_v38  ;;  %v523_v49 = vmul.f32 %v515_v42, %v515_v42 }
 0x168   : > { %v524_v30 = vsel %vm478_vm5, %v516_v32, 0.0  ;;  %v525_v31 = vsel %vm478_vm5, %v517_v33, 0.0  ;;  %v527_v40 = vsel %vm478_vm5, %v518_v34, 0.0  ;;  %v529_v44 = vsel %vm478_vm5, %v519_v28, 0.0 }
 0x169   : > { %v526_v36 = vadd.f32 %v525_v31, %v524_v30  ;;  %v531_v47 = vsel %vm478_vm5, %v520_v39, 0.0  ;;  %v533_v50 = vsel %vm478_vm5, %v521_v43, 0.0  ;;  %v535_v52 = vsel %vm478_vm5, %v522_v46, 0.0 }
 0x16a   : > { %v537_v55 = vsel %vm478_vm5, %v523_v49, 0.0 }
 0x16b   : > { %v528_v41 = vadd.f32 %v527_v40, %v526_v36 }
 0x16d   : > { %v530_v45 = vadd.f32 %v529_v44, %v528_v41  ;;  %v606_v63 = vpop.permute.xlu1 %605  ;;  %v632_v16 = vpop.permute.xlu0 %631 }
 0x16f   : > { %v532_v48 = vadd.f32 %v531_v47, %v530_v45 }
 0x171   : > { %v534_v51 = vadd.f32 %v533_v50, %v532_v48 }
 0x173   : > { %v536_v53 = vadd.f32 %v535_v52, %v534_v51 }
 0x175   : > { %v538_v58 = vadd.f32 %v537_v55, %v536_v53  ;;  %v637_v14 = vpop.permute.xlu1 %636  ;;  %v647_v32 = vpop.permute.xlu0 %646 }
 0x177   : > { %v539_v59 = vrot.slane %v538_v58, 4 }
 0x179   : > { %v540_v60 = vadd.f32 %v539_v59, %v538_v58 }
 0x17b   : > { %v541_v61 = vrot.slane %v540_v60, 2 }
 0x17d   : > { %v542_v62 = vadd.f32 %v541_v61, %v540_v60  ;;  %v652_v20 = vpop.permute.xlu1 %651  ;;  %v662_v52 = vpop.permute.xlu0 %661 }
 0x17f   : > { %v543_v10 = vrot.slane %v542_v62, 1 }
 0x181   : > { %v544_v11 = vadd.f32 %v543_v10, %v542_v62 }
 0x183   : > { %v545_v12 = vmul.f32 %v544_v11, %v506_v21 }
 0x185   : > { %v546_v13 = vadd.f32 1e-05, %v545_v12  ;;  %v667_v48 = vpop.permute.xlu1 %666 }
 0x187   : > { %850 = vrsqrt.f32 %v546_v13  ;;  %vm553_vm8 = vweird.f32 %v546_v13 }
 0x18d   : > { %v851_v17 = vpop.eup %850 }
 0x18e   : > { %v548_v18 = vmul.f32 %v851_v17, %v546_v13  ;;  %vm554_vm7 = vweird.f32 %v851_v17 }
 0x18f   : > { %vm555_vm9 = vmor %vm553_vm8, %vm554_vm7 }
 0x190   : > { %v549_v19 = vmul.f32 %v851_v17, %v548_v18 }
 0x192   : > { %v550_v22 = vmul.f32 0.5, %v549_v19 }
 0x194   : > { %v551_v33 = vsub.f32 1.5, %v550_v22 }
 0x196   : > { %v552_v34 = vmul.f32 %v851_v17, %v551_v33 }
 0x198   : > { %v556_v28 = vsel %vm555_vm9, %v851_v17, %v552_v34 }
 0x199   : > { %v557_v21 = vmul.f32 %v556_v28, %v1166_v24  ;;  %v558_v30 = vmul.f32 %v556_v28, %v1168_v25  ;;  %v559_v31 = vmul.f32 %v556_v28, %v1170_v26  ;;  %v560_v36 = vmul.f32 %v556_v28, %v1172_v27  ;;  %v657_v25 = vpop.permute.xlu2 %656 }
 0x19a   : > { %v561_v39 = vmul.f32 %v556_v28, %v1174_v29  ;;  %v562_v40 = vmul.f32 %v556_v28, %v513_v35  ;;  %v563_v41 = vmul.f32 %v556_v28, %v514_v38  ;;  %v564_v43 = vmul.f32 %v556_v28, %v515_v42 }
 0x19b   : > { %v613_v44 = vmul.f32 %v576_v37, %v557_v21  ;;  %v614_v45 = vmul.f32 %v581_v56, %v558_v30  ;;  %v615_v46 = vmul.f32 %v586_v57, %v559_v31  ;;  %v616_v47 = vmul.f32 %v591_v54, %v560_v36 }
 0x19c   : > { %v617_v49 = vmul.f32 %v596_v8, %v561_v39  ;;  %v618_v50 = vmul.f32 %v601_v9, %v562_v40  ;;  %v619_v51 = vmul.f32 %v606_v63, %v563_v41  ;;  %v620_v24 = vmul.f32 %v611_v15, %v564_v43 }
 0x19d   : > { %v669_v26 = vadd.f32 %v632_v16, %v613_v44  ;;  %v670_v53 = vadd.f32 %v637_v14, %v614_v45  ;;  %v671_v27 = vadd.f32 %v642_v23, %v615_v46  ;;  %v672_v55 = vadd.f32 %v647_v32, %v616_v47 }
 0x19e   : > { %v673_v29 = vadd.f32 %v652_v20, %v617_v49  ;;  %v674_v35 = vadd.f32 %v657_v25, %v618_v50  ;;  %v675_v38 = vadd.f32 %v662_v52, %v619_v51  ;;  %v676_v42 = vadd.f32 %v667_v48, %v620_v24 }
 0x19f   : > { %v677_v37 = vmax.f32 %v669_v26, 0.0  ;;  %v678_v56 = vmax.f32 %v670_v53, 0.0  ;;  %v679_v57 = vmax.f32 %v671_v27, 0.0  ;;  %v680_v54 = vmax.f32 %v672_v55, 0.0 }
 0x1a0   : > { %v681_v58 = vmax.f32 %v673_v29, 0.0  ;;  %v682_v59 = vmax.f32 %v674_v35, 0.0  ;;  %v683_v60 = vmax.f32 %v675_v38, 0.0  ;;  %v684_v8 = vmax.f32 %v676_v42, 0.0 }
 0x1a1   : > { %v685_v61 = vadd.f32 %v677_v37, %v942_v7  ;;  %v686_v62 = vadd.f32 %v678_v56, %v940_v6  ;;  %v687_v63 = vadd.f32 %v679_v57, %v933_v5  ;;  %v688_v9 = vadd.f32 %v680_v54, %v916_v2 }
 0x1a2   : > { %v689_v10 = vadd.f32 %v681_v58, %v925_v4  ;;  %v690_v11 = vadd.f32 %v682_v59, %v912_v1  ;;  %v691_v12 = vadd.f32 %v683_v60, %v920_v3  ;;  %v692_v7 = vadd.f32 %v684_v8, %v910_v0 }
 0x1a3   : > { %693 = vst.msk [vmem:[%s224_s17] sm:$0xff] %vm478_vm5, %v685_v61 }
 0x1a4   : > { %694 = vst.msk [vmem:[%s224_s17 + $0x8] sm:$0xff] %vm478_vm5, %v686_v62 }
 0x1a5   : > { %695 = vst.msk [vmem:[%s224_s17 + $0x10] sm:$0xff] %vm478_vm5, %v687_v63 }
 0x1a6   : > { %696 = vst.msk [vmem:[%s224_s17 + $0x18] sm:$0xff] %vm478_vm5, %v688_v9 }
 0x1a7   : > { %697 = vst.msk [vmem:[%s224_s17 + $0x20] sm:$0xff] %vm478_vm5, %v689_v10 }
 0x1a8   : > { %698 = vst.msk [vmem:[%s224_s17 + $0x28] sm:$0xff] %vm478_vm5, %v690_v11 }
 0x1a9   : > { %699 = vst.msk [vmem:[%s224_s17 + $0x30] sm:$0xff] %vm478_vm5, %v691_v12 }
 0x1aa   : > { %700 = vst.msk [vmem:[%s224_s17 + $0x38] sm:$0xff] %vm478_vm5, %v692_v7 }
 0x1ab PF: > { %s15_s18 = sadd.s32 1, %s858_s18  }
 0x1ac   : > { %p12_p4 = scmp.ge.s32.totalorder %s15_s18, 4  }
 0x1ae   :  { %14 = sbr.rel (!%p12_p4) target bundleno = 1 (0x1), region = 70 }

</bundles_post_ra>
